<compile_context>
chip_gen: v7x
topology: tpu7x:2x2x1
jax: 0.10.0
libtpu: 0.0.40
codegen_flags: <defaults>
</compile_context>

<pallas_src>
import functools
import math

import jax
import jax.numpy as jnp
from jax.experimental import pallas as pl
from jax.experimental.pallas import tpu as pltpu

D_MODEL = 32
NUM_HEADS = 4
HEAD_DIM = D_MODEL // NUM_HEADS
SEQ = 8
BATCH = 2
D_PAD = 128  # lane-dense padded feature width


def _attention_kernel(q_ref, k_ref, v_ref,
                      wq_ref, bq_ref, wk_ref, bk_ref,
                      wv_ref, bv_ref, wo_ref, bo_ref,
                      hmask_ref, o_ref, *, B, S, H):
    """Whole attention forward in one invocation.

    q/k/v_ref: (B*S, Dp) padded activations.  w*_ref: (Dp, Dp), b*_ref: (1, Dp).
    hmask_ref: (H, 1, Dp) with 1.0 on the lanes belonging to head h (0 on
    other heads' lanes and on the zero-padded lanes).
    """
    Dp = q_ref.shape[-1]

    # Projections (1/sqrt(head_dim) already folded into wq/bq by the wrapper).
    Q = jnp.dot(q_ref[...], wq_ref[...], preferred_element_type=jnp.float32) + bq_ref[...]
    K = jnp.dot(k_ref[...], wk_ref[...], preferred_element_type=jnp.float32) + bk_ref[...]
    V = jnp.dot(v_ref[...], wv_ref[...], preferred_element_type=jnp.float32) + bv_ref[...]

    hmask = hmask_ref[...].reshape(1, H, 1, Dp)

    def to_heads(x, mask):
        # (B*S, Dp) -> (B*H, S, Dp); optionally keep only head-h lanes.
        xb = jnp.broadcast_to(x.reshape(B, 1, S, Dp), (B, H, S, Dp))
        if mask:
            xb = xb * hmask
        return xb.reshape(B * H, S, Dp)

    Qb = to_heads(Q, mask=False)   # masked K kills non-head lanes of Q in the dot
    Kb = to_heads(K, mask=True)
    Vb = to_heads(V, mask=True)

    # scores[n, i, j] = <Q_h(i), K_h(j)> / sqrt(hd), n = b*H + h  (scale pre-folded)
    scores = jnp.einsum('nqd,nkd->nqk', Qb, Kb, preferred_element_type=jnp.float32)
    # TODO(synk): optional `mask` argument of the PyTorch forward is not
    # exercised (mask=None path); a mask would be a jnp.where here.
    scores = scores - jnp.max(scores, axis=-1, keepdims=True)
    p = jnp.exp(scores)
    p = p * pl.reciprocal(jnp.sum(p, axis=-1, keepdims=True), approx=True)

    # Weighted sum; head h only populates its own (masked) lanes of Vb.
    ctx = jnp.einsum('nqk,nkd->nqd', p, Vb, preferred_element_type=jnp.float32)
    # Heads occupy disjoint lanes -> summing over the head axis == concat(heads).
    attn = jnp.sum(ctx.reshape(B, H, S, Dp), axis=1).reshape(B * S, Dp)

    out = jnp.dot(attn, wo_ref[...], preferred_element_type=jnp.float32) + bo_ref[...]
    o_ref[...] = out.astype(o_ref.dtype)


@jax.jit
def attention_pallas(query, key, value, params):
    """query/key/value: [B, S, D] float32. params: dict of [D_in, D_out] weights."""
    B, S, D = query.shape
    H = NUM_HEADS
    hd = D // H
    Dp = D_PAD
    scale = 1.0 / math.sqrt(hd)

    def pad_w(w):  # (D, D) -> (Dp, Dp), zero-padded
        return jnp.zeros((Dp, Dp), w.dtype).at[:D, :D].set(w)

    def pad_b(b):  # (1, D) -> (1, Dp)
        return jnp.zeros((1, Dp), b.dtype).at[:, :D].set(b)

    def pad_x(x):  # (B, S, D) -> (B*S, Dp)   (layout plumbing, not compute)
        xp = jnp.zeros((B, S, Dp), x.dtype).at[:, :, :D].set(x)
        return xp.reshape(B * S, Dp)

    # Fold the 1/sqrt(head_dim) score scale into the Q projection.
    wq, bq = pad_w(params["wq"] * scale), pad_b(params["bq"] * scale)
    wk, bk = pad_w(params["wk"]), pad_b(params["bk"])
    wv, bv = pad_w(params["wv"]), pad_b(params["bv"])
    wo, bo = pad_w(params["wo"]), pad_b(params["bo"])

    # Head-h lane selector: 1.0 on lanes [h*hd, (h+1)*hd), 0 elsewhere (incl. pad).
    lane = jnp.arange(Dp, dtype=jnp.int32)
    head = jnp.arange(H, dtype=jnp.int32)
    head_mask = (lane[None, :] // hd == head[:, None]).astype(jnp.float32)
    head_mask = head_mask.reshape(H, 1, Dp)

    kernel = functools.partial(_attention_kernel, B=B, S=S, H=H)
    vmem = pl.BlockSpec(memory_space=pltpu.MemorySpace.VMEM)  # full array, resident in VMEM

    out_pad = pl.pallas_call(
        kernel,
        out_shape=jax.ShapeDtypeStruct((B * S, Dp), query.dtype),
        in_specs=[vmem] * 12,
        out_specs=vmem,
    )(pad_x(query), pad_x(key), pad_x(value),
      wq, bq, wk, bk, wv, bv, wo, bo, head_mask)

    return out_pad.reshape(B, S, Dp)[:, :, :D]


def attention_reference(query, key, value, params):
    """Pure-JAX reference mirroring the PyTorch forward (mask=None)."""
    B, S, D = query.shape
    H, hd = NUM_HEADS, D // NUM_HEADS

    def lin(x, w, b):
        return x @ w + b

    Q = lin(query, params["wq"], params["bq"]).reshape(B, S, H, hd).transpose(0, 2, 1, 3)
    K = lin(key, params["wk"], params["bk"]).reshape(B, S, H, hd).transpose(0, 2, 1, 3)
    V = lin(value, params["wv"], params["bv"]).reshape(B, S, H, hd).transpose(0, 2, 1, 3)

    scores = jnp.einsum("bhqd,bhkd->bhqk", Q, K) / math.sqrt(hd)
    p = jax.nn.softmax(scores, axis=-1)
    out = jnp.einsum("bhqk,bhkd->bhqd", p, V)
    out = out.transpose(0, 2, 1, 3).reshape(B, S, D)
    return lin(out, params["wo"], params["bo"])


def make_params(key):
    ks = jax.random.split(key, 8)
    bound = 1.0 / math.sqrt(D_MODEL)

    def u(k, shape):
        return jax.random.uniform(k, shape, jnp.float32, -bound, bound)

    # Weights stored as [D_in, D_out] (already transposed vs. nn.Linear).
    return {
        "wq": u(ks[0], (D_MODEL, D_MODEL)), "bq": u(ks[1], (1, D_MODEL)),
        "wk": u(ks[2], (D_MODEL, D_MODEL)), "bk": u(ks[3], (1, D_MODEL)),
        "wv": u(ks[4], (D_MODEL, D_MODEL)), "bv": u(ks[5], (1, D_MODEL)),
        "wo": u(ks[6], (D_MODEL, D_MODEL)), "bo": u(ks[7], (1, D_MODEL)),
    }


if __name__ == "__main__":
    root = jax.random.PRNGKey(0)
    kp, kq, kk, kv = jax.random.split(root, 4)

    params = make_params(kp)
    query = jax.random.normal(kq, (BATCH, SEQ, D_MODEL), jnp.float32)
    key = jax.random.normal(kk, (BATCH, SEQ, D_MODEL), jnp.float32)
    value = jax.random.normal(kv, (BATCH, SEQ, D_MODEL), jnp.float32)

    out = attention_pallas(query, key, value, params)
    out = jax.block_until_ready(out)

    ref = attention_reference(query, key, value, params)
    assert out.shape == (BATCH, SEQ, D_MODEL)
    # Tolerance loosened from 1e-5 because the softmax denominator uses the
    # EUP approximate reciprocal (pl.reciprocal(..., approx=True)).
    assert jnp.allclose(out, ref, atol=2e-3, rtol=2e-3), "mismatch vs reference"

    print("KERNEL_OK")
</pallas_src>

<mosaic_0001>
module attributes {stable_mosaic.version = 11 : i64} {
  func.func @_attention_kernel(%arg0: memref<16x128xf32, #tpu.memory_space<vmem>>, %arg1: memref<16x128xf32, #tpu.memory_space<vmem>>, %arg2: memref<16x128xf32, #tpu.memory_space<vmem>>, %arg3: memref<128x128xf32, #tpu.memory_space<vmem>>, %arg4: memref<1x128xf32, #tpu.memory_space<vmem>>, %arg5: memref<128x128xf32, #tpu.memory_space<vmem>>, %arg6: memref<1x128xf32, #tpu.memory_space<vmem>>, %arg7: memref<128x128xf32, #tpu.memory_space<vmem>>, %arg8: memref<1x128xf32, #tpu.memory_space<vmem>>, %arg9: memref<128x128xf32, #tpu.memory_space<vmem>>, %arg10: memref<1x128xf32, #tpu.memory_space<vmem>>, %arg11: memref<4x1x128xf32, #tpu.memory_space<vmem>>, %arg12: memref<16x128xf32, #tpu.memory_space<vmem>>) attributes {dimension_semantics = [], scalar_prefetch = 0 : i64, scratch_operands = 0 : i64, tpu.core_type = #tpu.core_type<tc>} {
    %c0 = arith.constant 0 : index
    %c0_0 = arith.constant 0 : index
    %0 = vector.load %arg0[%c0, %c0_0] : memref<16x128xf32, #tpu.memory_space<vmem>>, vector<16x128xf32>
    %c0_1 = arith.constant 0 : index
    %c0_2 = arith.constant 0 : index
    %1 = vector.load %arg3[%c0_1, %c0_2] : memref<128x128xf32, #tpu.memory_space<vmem>>, vector<128x128xf32>
    %cst = arith.constant dense<0.000000e+00> : vector<16x128xf32>
    %2 = tpu.matmul %0, %1, %cst {dimension_numbers = #tpu.dot_dimension_numbers<[1], [0], [0], [1], [0, 0, 1, 1], [], []>} : vector<16x128xf32>, vector<128x128xf32>, vector<16x128xf32> -> vector<16x128xf32>
    %c0_3 = arith.constant 0 : index
    %c0_4 = arith.constant 0 : index
    %3 = vector.load %arg4[%c0_3, %c0_4] : memref<1x128xf32, #tpu.memory_space<vmem>>, vector<1x128xf32>
    %4 = vector.broadcast %3 : vector<1x128xf32> to vector<16x128xf32>
    %5 = arith.addf %2, %4 : vector<16x128xf32>
    %c0_5 = arith.constant 0 : index
    %c0_6 = arith.constant 0 : index
    %6 = vector.load %arg1[%c0_5, %c0_6] : memref<16x128xf32, #tpu.memory_space<vmem>>, vector<16x128xf32>
    %c0_7 = arith.constant 0 : index
    %c0_8 = arith.constant 0 : index
    %7 = vector.load %arg5[%c0_7, %c0_8] : memref<128x128xf32, #tpu.memory_space<vmem>>, vector<128x128xf32>
    %cst_9 = arith.constant dense<0.000000e+00> : vector<16x128xf32>
    %8 = tpu.matmul %6, %7, %cst_9 {dimension_numbers = #tpu.dot_dimension_numbers<[1], [0], [0], [1], [0, 0, 1, 1], [], []>} : vector<16x128xf32>, vector<128x128xf32>, vector<16x128xf32> -> vector<16x128xf32>
    %c0_10 = arith.constant 0 : index
    %c0_11 = arith.constant 0 : index
    %9 = vector.load %arg6[%c0_10, %c0_11] : memref<1x128xf32, #tpu.memory_space<vmem>>, vector<1x128xf32>
    %10 = vector.broadcast %9 : vector<1x128xf32> to vector<16x128xf32>
    %11 = arith.addf %8, %10 : vector<16x128xf32>
    %c0_12 = arith.constant 0 : index
    %c0_13 = arith.constant 0 : index
    %12 = vector.load %arg2[%c0_12, %c0_13] : memref<16x128xf32, #tpu.memory_space<vmem>>, vector<16x128xf32>
    %c0_14 = arith.constant 0 : index
    %c0_15 = arith.constant 0 : index
    %13 = vector.load %arg7[%c0_14, %c0_15] : memref<128x128xf32, #tpu.memory_space<vmem>>, vector<128x128xf32>
    %cst_16 = arith.constant dense<0.000000e+00> : vector<16x128xf32>
    %14 = tpu.matmul %12, %13, %cst_16 {dimension_numbers = #tpu.dot_dimension_numbers<[1], [0], [0], [1], [0, 0, 1, 1], [], []>} : vector<16x128xf32>, vector<128x128xf32>, vector<16x128xf32> -> vector<16x128xf32>
    %c0_17 = arith.constant 0 : index
    %c0_18 = arith.constant 0 : index
    %15 = vector.load %arg8[%c0_17, %c0_18] : memref<1x128xf32, #tpu.memory_space<vmem>>, vector<1x128xf32>
    %16 = vector.broadcast %15 : vector<1x128xf32> to vector<16x128xf32>
    %17 = arith.addf %14, %16 : vector<16x128xf32>
    %c0_19 = arith.constant 0 : index
    %c0_20 = arith.constant 0 : index
    %c0_21 = arith.constant 0 : index
    %18 = vector.load %arg11[%c0_19, %c0_20, %c0_21] : memref<4x1x128xf32, #tpu.memory_space<vmem>>, vector<4x1x128xf32>
    %19 = vector.shape_cast %18 : vector<4x1x128xf32> to vector<1x4x1x128xf32>
    %20 = vector.shape_cast %5 : vector<16x128xf32> to vector<2x1x8x128xf32>
    %21 = vector.shape_cast %20 : vector<2x1x8x128xf32> to vector<2x1x8x128xf32>
    %22 = vector.broadcast %21 : vector<2x1x8x128xf32> to vector<2x4x8x128xf32>
    %23 = vector.shape_cast %22 : vector<2x4x8x128xf32> to vector<8x8x128xf32>
    %24 = vector.shape_cast %11 : vector<16x128xf32> to vector<2x1x8x128xf32>
    %25 = vector.shape_cast %24 : vector<2x1x8x128xf32> to vector<2x1x8x128xf32>
    %26 = vector.broadcast %25 : vector<2x1x8x128xf32> to vector<2x4x8x128xf32>
    %27 = vector.broadcast %19 : vector<1x4x1x128xf32> to vector<2x4x8x128xf32>
    %28 = arith.mulf %26, %27 : vector<2x4x8x128xf32>
    %29 = vector.shape_cast %28 : vector<2x4x8x128xf32> to vector<8x8x128xf32>
    %30 = vector.shape_cast %17 : vector<16x128xf32> to vector<2x1x8x128xf32>
    %31 = vector.shape_cast %30 : vector<2x1x8x128xf32> to vector<2x1x8x128xf32>
    %32 = vector.broadcast %31 : vector<2x1x8x128xf32> to vector<2x4x8x128xf32>
    %33 = vector.broadcast %19 : vector<1x4x1x128xf32> to vector<2x4x8x128xf32>
    %34 = arith.mulf %32, %33 : vector<2x4x8x128xf32>
    %35 = vector.shape_cast %34 : vector<2x4x8x128xf32> to vector<8x8x128xf32>
    "tpu.trace_start"() <{level = 10 : i32, message = "nqd,nkd->nqk"}> : () -> ()
    %cst_22 = arith.constant dense<0.000000e+00> : vector<8x8x8xf32>
    %36 = tpu.matmul %23, %29, %cst_22 {dimension_numbers = #tpu.dot_dimension_numbers<[2], [2], [1], [1], [0, 0, 0, 1, 1, 1], [0], [0]>} : vector<8x8x128xf32>, vector<8x8x128xf32>, vector<8x8x8xf32> -> vector<8x8x8xf32>
    "tpu.trace_stop"() : () -> ()
    %cst_23 = arith.constant dense<0xFF800000> : vector<8x8xf32>
    %37 = vector.multi_reduction <maximumf>, %36, %cst_23 [2] : vector<8x8x8xf32> to vector<8x8xf32>
    %38 = vector.shape_cast %37 : vector<8x8xf32> to vector<8x8x1xf32>
    %39 = vector.broadcast %38 : vector<8x8x1xf32> to vector<8x8x8xf32>
    %40 = arith.subf %36, %39 : vector<8x8x8xf32>
    %41 = math.exp %40 : vector<8x8x8xf32>
    %cst_24 = arith.constant dense<0.000000e+00> : vector<8x8xf32>
    %42 = vector.multi_reduction <add>, %41, %cst_24 [2] : vector<8x8x8xf32> to vector<8x8xf32>
    %43 = vector.shape_cast %42 : vector<8x8xf32> to vector<8x8x1xf32>
    %44 = tpu.reciprocal %43 {approx = true} : vector<8x8x1xf32> -> vector<8x8x1xf32>
    %45 = vector.broadcast %44 : vector<8x8x1xf32> to vector<8x8x8xf32>
    %46 = arith.mulf %41, %45 : vector<8x8x8xf32>
    "tpu.trace_start"() <{level = 10 : i32, message = "nqk,nkd->nqd"}> : () -> ()
    %cst_25 = arith.constant dense<0.000000e+00> : vector<8x8x128xf32>
    %47 = tpu.matmul %46, %35, %cst_25 {dimension_numbers = #tpu.dot_dimension_numbers<[2], [1], [1], [2], [0, 0, 0, 1, 1, 2], [0], [0]>} : vector<8x8x8xf32>, vector<8x8x128xf32>, vector<8x8x128xf32> -> vector<8x8x128xf32>
    "tpu.trace_stop"() : () -> ()
    %48 = vector.shape_cast %47 : vector<8x8x128xf32> to vector<2x4x8x128xf32>
    %cst_26 = arith.constant dense<0.000000e+00> : vector<2x8x128xf32>
    %49 = vector.multi_reduction <add>, %48, %cst_26 [1] : vector<2x4x8x128xf32> to vector<2x8x128xf32>
    %50 = vector.shape_cast %49 : vector<2x8x128xf32> to vector<16x128xf32>
    %c0_27 = arith.constant 0 : index
    %c0_28 = arith.constant 0 : index
    %51 = vector.load %arg9[%c0_27, %c0_28] : memref<128x128xf32, #tpu.memory_space<vmem>>, vector<128x128xf32>
    %cst_29 = arith.constant dense<0.000000e+00> : vector<16x128xf32>
    %52 = tpu.matmul %50, %51, %cst_29 {dimension_numbers = #tpu.dot_dimension_numbers<[1], [0], [0], [1], [0, 0, 1, 1], [], []>} : vector<16x128xf32>, vector<128x128xf32>, vector<16x128xf32> -> vector<16x128xf32>
    %c0_30 = arith.constant 0 : index
    %c0_31 = arith.constant 0 : index
    %53 = vector.load %arg10[%c0_30, %c0_31] : memref<1x128xf32, #tpu.memory_space<vmem>>, vector<1x128xf32>
    %54 = vector.broadcast %53 : vector<1x128xf32> to vector<16x128xf32>
    %55 = arith.addf %52, %54 : vector<16x128xf32>
    %c0_32 = arith.constant 0 : index
    %c0_33 = arith.constant 0 : index
    %56 = vector.load %arg12[%c0_32, %c0_33] : memref<16x128xf32, #tpu.memory_space<vmem>>, vector<16x128xf32>
    tpu.vector_store %arg12[%c0_32, %c0_33], %55 {strides = array<i32>} : memref<16x128xf32, #tpu.memory_space<vmem>>, vector<16x128xf32>,
    return
  }
}

</mosaic_0001>

<bundles_post_ra>
// kernel: attention_pallas.1
= control target key start
LH: loop header
LB: loop body
LE: loop exit
PB: predicated region body
PF: predicated region fallthrough
CT: control target
= control target key end

     0   :  { %s2724_s0 = inlined_call_operand.vmem [shape: f32[16,128], index: 0, kind: input, shape index: {}]   ;;  %s2725_s1 = inlined_call_operand.vmem [shape: f32[16,128], index: 1, kind: input, shape index: {}]   ;;  %s2726_s2 = inlined_call_operand.vmem [shape: f32[16,128], index: 2, kind: input, shape index: {}]   ;;  %s2727_s3 = inlined_call_operand.vmem [shape: f32[128,128], index: 3, kind: input, shape index: {}]   ;;  %s2728_s4 = inlined_call_operand.vmem [shape: f32[1,128], index: 4, kind: input, shape index: {}]   ;;  %s2729_s5 = inlined_call_operand.vmem [shape: f32[128,128], index: 5, kind: input, shape index: {}]   ;;  %s2730_s6 = inlined_call_operand.vmem [shape: f32[1,128], index: 6, kind: input, shape index: {}]   ;;  %s2731_s7 = inlined_call_operand.vmem [shape: f32[128,128], index: 7, kind: input, shape index: {}]   ;;  %s2732_s8 = inlined_call_operand.vmem [shape: f32[1,128], index: 8, kind: input, shape index: {}]   ;;  %s2733_s9 = inlined_call_operand.vmem [shape: f32[128,128], index: 9, kind: input, shape index: {}]   ;;  %s2734_s10 = inlined_call_operand.vmem [shape: f32[1,128], index: 10, kind: input, shape index: {}]   ;;  %s2735_s11 = inlined_call_operand.vmem [shape: f32[4,1,128], index: 11, kind: input, shape index: {}]   ;;  %s2736_s12 = inlined_call_operand.hbm [shape: f32[16,128], index: 12, kind: output, shape index: {}]  }
   0x1   :  { %v144_v0 = vld [vmem:[%s2729_s5] sm:$0xff]  ;;  %v145_v1 = vld [vmem:[%s2729_s5 + $0x8] sm:$0xff]  ;;  %v146_v2 = vld [vmem:[%s2729_s5 + $0x10] sm:$0xff] }
   0x2   :  { %v2113_v3 = vpack.c.bf16 %v145_v1, %v144_v0  ;;  %v147_v4 = vld [vmem:[%s2729_s5 + $0x18] sm:$0xff]  ;;  %v44_v5 = vld [vmem:[%s2727_s3] sm:$0xff]  ;;  %v45_v6 = vld [vmem:[%s2727_s3 + $0x8] sm:$0xff] }
   0x3   :  { %v2117_v7 = vpack.c.bf16 %v147_v4, %v146_v2  ;;  %v2081_v8 = vpack.c.bf16 %v45_v6, %v44_v5  ;;  %v148_v9 = vld [vmem:[%s2729_s5 + $0x20] sm:$0xff]  ;;  %v149_v10 = vld [vmem:[%s2729_s5 + $0x28] sm:$0xff]  ;;  %v46_v11 = vld [vmem:[%s2727_s3 + $0x10] sm:$0xff] }
   0x4   :  { %2114 = vmatprep.subr.bf16.mxu1 %v2113_v3  ;;  %v47_v12 = vld [vmem:[%s2727_s3 + $0x18] sm:$0xff]  ;;  %v48_v14 = vld [vmem:[%s2727_s3 + $0x20] sm:$0xff]  ;;  %v49_v15 = vld [vmem:[%s2727_s3 + $0x28] sm:$0xff]  ;;  %v2121_v16 = vpack.c.bf16 %v149_v10, %v148_v9 }
   0x5   :  { %2116 = vmatpush3.bf16.msra.mxu1 %v2113_v3  ;;  %2082 = vmatprep.subr.bf16.mxu0 %v2081_v8  ;;  %v2085_v13 = vpack.c.bf16 %v47_v12, %v46_v11  ;;  %v150_v17 = vld [vmem:[%s2729_s5 + $0x30] sm:$0xff]  ;;  %v151_v18 = vld [vmem:[%s2729_s5 + $0x38] sm:$0xff]  ;;  %v2089_v19 = vpack.c.bf16 %v49_v15, %v48_v14  ;;  %v152_v23 = vld [vmem:[%s2729_s5 + $0x40] sm:$0xff] }
   0x6   :  { %2118 = vmatprep.subr.bf16.mxu1 %v2117_v7  ;;  %2084 = vmatpush3.bf16.msra.mxu0 %v2081_v8  ;;  %v50_v20 = vld [vmem:[%s2727_s3 + $0x30] sm:$0xff]  ;;  %v51_v21 = vld [vmem:[%s2727_s3 + $0x38] sm:$0xff]  ;;  %v2125_v22 = vpack.c.bf16 %v151_v18, %v150_v17  ;;  %v153_v24 = vld [vmem:[%s2729_s5 + $0x48] sm:$0xff] }
   0x7   :  { %2086 = vmatprep.subr.bf16.mxu0 %v2085_v13  ;;  %v2093_v25 = vpack.c.bf16 %v51_v21, %v50_v20  ;;  %v142_v26 = vld [vmem:[%s2725_s1] sm:$0xff]  ;;  %v53_v28 = vld [vmem:[%s2727_s3 + $0x48] sm:$0xff] }
   0x8   :  { %v52_v27 = vld [vmem:[%s2727_s3 + $0x40] sm:$0xff]  ;;  %1928 = vmatprep.mubr.f32.mxu1 %v142_v26 }
   0x9   :  { %2120 = vmatpush3.bf16.msra.mxu1 %v2117_v7  ;;  %v42_v29 = vld [vmem:[%s2724_s0] sm:$0xff] }
   0xa   :  { %2122 = vmatprep.subr.bf16.mxu1 %v2121_v16  ;;  %2088 = vmatpush3.bf16.msra.mxu0 %v2085_v13 }
   0xb   :  { %2090 = vmatprep.subr.bf16.mxu0 %v2089_v19  ;;  %1893 = vmatprep.mubr.f32.mxu0 %v42_v29 }
   0xd   :  { %2124 = vmatpush3.bf16.msra.mxu1 %v2121_v16 }
   0xe   :  { %17 = vsyncpa [#allocation3], 0  ;;  %2126 = vmatprep.subr.bf16.mxu1 %v2125_v22  ;;  %2092 = vmatpush3.bf16.msra.mxu0 %v2089_v19  ;;  %v2129_v30 = vpack.c.bf16 %v153_v24, %v152_v23  ;;  %v154_v31 = vld [vmem:[%s2729_s5 + $0x50] sm:$0xff]  ;;  %v155_v32 = vld [vmem:[%s2729_s5 + $0x58] sm:$0xff]  ;;  %v2097_v33 = vpack.c.bf16 %v53_v28, %v52_v27  ;;  %v2282_v52 = vmov 0.0   ;;  %vm2283_vm0 = vmmov 0  }
   0xf   :  { %2094 = vmatprep.subr.bf16.mxu0 %v2093_v25  ;;  %v54_v34 = vld [vmem:[%s2727_s3 + $0x50] sm:$0xff]  ;;  %v55_v35 = vld [vmem:[%s2727_s3 + $0x58] sm:$0xff]  ;;  %v2133_v36 = vpack.c.bf16 %v155_v32, %v154_v31  ;;  %v156_v37 = vld [vmem:[%s2729_s5 + $0x60] sm:$0xff]  ;;  %vm946_vm1 = vcmask 64512   ;;  %s2284_s21 = smov [#allocation2]  }
  0x10   :  { %v157_v38 = vld [vmem:[%s2729_s5 + $0x68] sm:$0xff]  ;;  %v2101_v39 = vpack.c.bf16 %v55_v35, %v54_v34  ;;  %v56_v40 = vld [vmem:[%s2727_s3 + $0x60] sm:$0xff]  ;;  %v158_v43 = vld [vmem:[%s2729_s5 + $0x70] sm:$0xff] }
  0x11   :  { %2128 = vmatpush3.bf16.msra.mxu1 %v2125_v22  ;;  %v57_v41 = vld [vmem:[%s2727_s3 + $0x68] sm:$0xff]  ;;  %v2137_v42 = vpack.c.bf16 %v157_v38, %v156_v37  ;;  %v159_v44 = vld [vmem:[%s2729_s5 + $0x78] sm:$0xff]  ;;  %v58_v46 = vld [vmem:[%s2727_s3 + $0x70] sm:$0xff] }
  0x12   :  { %2130 = vmatprep.subr.bf16.mxu1 %v2129_v30  ;;  %2096 = vmatpush3.bf16.msra.mxu0 %v2093_v25  ;;  %v2105_v45 = vpack.c.bf16 %v57_v41, %v56_v40  ;;  %v59_v47 = vld [vmem:[%s2727_s3 + $0x78] sm:$0xff]  ;;  %v2141_v48 = vpack.c.bf16 %v159_v44, %v158_v43  ;;  %v143_v50 = vld [vmem:[%s2725_s1 + $0x8] sm:$0xff]  ;;  %v1742_v53 = vld [vmem:[%s2730_s6] ss:$0 sm:$0xff] }
  0x13   :  { %2098 = vmatprep.subr.bf16.mxu0 %v2097_v33  ;;  %v2109_v49 = vpack.c.bf16 %v59_v47, %v58_v46  ;;  %v43_v51 = vld [vmem:[%s2724_s0 + $0x8] sm:$0xff]  ;;  %v2469_v57 = vld [vmem:[%s2735_s11] ss:$0 sm:$0xff]  ;;  %v2478_v63 = vld [vmem:[%s2735_s11 + $0x1] ss:$0 sm:$0xff]  ;;  %s1730_s0 = sshll.u32 %s2284_s21, 4  ;;  %s1731_s0 = int_to_ptr.vmem [resolvable:$true] %s1730_s0 }
  0x14   :  { %v1741_v59 = vld [vmem:[%s2728_s4] ss:$0 sm:$0xff]  ;;  %v2485_v1 = vld [vmem:[%s2735_s11 + $0x2] ss:$0 sm:$0xff]  ;;  %v2494_v3 = vld [vmem:[%s2735_s11 + $0x3] ss:$0 sm:$0xff]  ;;  %p2263_p1 = scmp.lt.s32.totalorder %s1731_s0, %s1731_s0 }
  0x15   :  { %2132 = vmatpush3.bf16.msra.mxu1 %v2129_v30  ;;  %v244_v11 = vld [vmem:[%s2731_s7] sm:$0xff]  ;;  %v245_v12 = vld [vmem:[%s2731_s7 + $0x8] sm:$0xff]  ;;  %v246_v13 = vld [vmem:[%s2731_s7 + $0x10] sm:$0xff] }
  0x16   :  { %2134 = vmatprep.subr.bf16.mxu1 %v2133_v36  ;;  %2100 = vmatpush3.bf16.msra.mxu0 %v2097_v33  ;;  %v2145_v14 = vpack.c.bf16 %v245_v12, %v244_v11  ;;  %v247_v15 = vld [vmem:[%s2731_s7 + $0x18] sm:$0xff]  ;;  %v248_v17 = vld [vmem:[%s2731_s7 + $0x20] sm:$0xff]  ;;  %v249_v18 = vld [vmem:[%s2731_s7 + $0x28] sm:$0xff] }
  0x17   :  { %2102 = vmatprep.subr.bf16.mxu0 %v2101_v39  ;;  %v2149_v16 = vpack.c.bf16 %v247_v15, %v246_v13  ;;  %v2153_v19 = vpack.c.bf16 %v249_v18, %v248_v17  ;;  %v242_v20 = vld [vmem:[%s2726_s2] sm:$0xff]  ;;  %v250_v21 = vld [vmem:[%s2731_s7 + $0x30] sm:$0xff]  ;;  %v251_v22 = vld [vmem:[%s2731_s7 + $0x38] sm:$0xff] }
  0x18   :  { %v2157_v23 = vpack.c.bf16 %v251_v22, %v250_v21  ;;  %v252_v24 = vld [vmem:[%s2731_s7 + $0x40] sm:$0xff]  ;;  %v253_v25 = vld [vmem:[%s2731_s7 + $0x48] sm:$0xff]  ;;  %v254_v27 = vld [vmem:[%s2731_s7 + $0x50] sm:$0xff] }
  0x19   :  { %2136 = vmatpush3.bf16.msra.mxu1 %v2133_v36  ;;  %v2161_v26 = vpack.c.bf16 %v253_v25, %v252_v24  ;;  %v255_v28 = vld [vmem:[%s2731_s7 + $0x58] sm:$0xff]  ;;  %v256_v30 = vld [vmem:[%s2731_s7 + $0x60] sm:$0xff]  ;;  %v257_v31 = vld [vmem:[%s2731_s7 + $0x68] sm:$0xff] }
  0x1a   :  { %2138 = vmatprep.subr.bf16.mxu1 %v2137_v42  ;;  %2104 = vmatpush3.bf16.msra.mxu0 %v2101_v39  ;;  %v2165_v29 = vpack.c.bf16 %v255_v28, %v254_v27  ;;  %v2169_v32 = vpack.c.bf16 %v257_v31, %v256_v30  ;;  %v258_v33 = vld [vmem:[%s2731_s7 + $0x70] sm:$0xff]  ;;  %v259_v34 = vld [vmem:[%s2731_s7 + $0x78] sm:$0xff]  ;;  %v243_v36 = vld [vmem:[%s2726_s2 + $0x8] sm:$0xff] }
  0x1b   :  { %2106 = vmatprep.subr.bf16.mxu0 %v2105_v45  ;;  %v2173_v35 = vpack.c.bf16 %v259_v34, %v258_v33 }
  0x1d   :  { %2140 = vmatpush3.bf16.msra.mxu1 %v2137_v42 }
  0x1e   :  { %2142 = vmatprep.subr.bf16.mxu1 %v2141_v48  ;;  %2108 = vmatpush3.bf16.msra.mxu0 %v2105_v45 }
  0x1f   :  { %2110 = vmatprep.subr.bf16.mxu0 %v2109_v49 }
  0x21   :  { %2144 = vmatpush3.bf16.msra.mxu1 %v2141_v48 }
  0x22   :  { %2112 = vmatpush3.bf16.msra.mxu0 %v2109_v49  ;;  %1966 = vmatprep.subr.mxu1 %v2282_v52 }
  0x23   :  { %2146 = vmatprep.subr.bf16.mxu0 %v2145_v14 }
  0x24   :  { %1929 = vmatmul.mubr.f32.vlgmr.msra.gmra.mrb[0].mxu1 %v143_v50 }
  0x25   :  { %1894 = vmatmul.mubr.f32.vlgmr.msra.gmra.mrb[0].mxu0 %v43_v51  ;;  %1968 = vmatprep.mubr.msk.f32.mxu1 %vm2283_vm0, %v2282_v52 }
  0x26   :  { %2148 = vmatpush3.bf16.msra.mxu0 %v2145_v14  ;;  %1963 = vmatprep.mubr.f32.mxu0 %v242_v20 }
  0x27   :  { %2150 = vmatprep.subr.bf16.mxu0 %v2149_v16 }
  0x2a   :  { %2152 = vmatpush3.bf16.msra.mxu0 %v2149_v16 }
  0x2b   :  { %2154 = vmatprep.subr.bf16.mxu0 %v2153_v19 }
  0x2e   :  { %2156 = vmatpush3.bf16.msra.mxu0 %v2153_v19 }
  0x2f   :  { %2158 = vmatprep.subr.bf16.mxu0 %v2157_v23 }
  0x32   :  { %2160 = vmatpush3.bf16.msra.mxu0 %v2157_v23 }
  0x33   :  { %2162 = vmatprep.subr.bf16.mxu0 %v2161_v26 }
  0x36   :  { %2164 = vmatpush3.bf16.msra.mxu0 %v2161_v26 }
  0x37   :  { %2166 = vmatprep.subr.bf16.mxu0 %v2165_v29 }
  0x3a   :  { %2168 = vmatpush3.bf16.msra.mxu0 %v2165_v29 }
  0x3b   :  { %2170 = vmatprep.subr.bf16.mxu0 %v2169_v32 }
  0x3e   :  { %2172 = vmatpush3.bf16.msra.mxu0 %v2169_v32 }
  0x3f   :  { %2174 = vmatprep.subr.bf16.mxu0 %v2173_v35 }
  0x42   :  { %2176 = vmatpush3.bf16.msra.mxu0 %v2173_v35 }
  0x45   :  { %1964 = vmatmul.mubr.f32.vlgmr.msra.gmra.mrb[2].mxu0 %v243_v36 }
  0xf7   :  { %v1930_v54 = vpop.f32.mrb[0].mxu1 }
  0xf8   :  { %v233_v55 = vpop.f32.mrb[1].mxu1  ;;  %v1895_v56 = vpop.f32.mrb[0].mxu0  ;;  %v239_v4 = vadd.f32 %v1930_v54, %v1742_v53 }
  0xf9   :  { %v234_v58 = vadd.f32 %v1742_v53, %v233_v55  ;;  %v133_v60 = vpop.f32.mrb[1].mxu0  ;;  %v139_v7 = vadd.f32 %v1895_v56, %v1741_v59 }
  0xfa   :  { %v134_v62 = vadd.f32 %v1741_v59, %v133_v60  ;;  %v374_v6 = vmul.f32 %v2469_v57, %v239_v4  ;;  %v375_v8 = vmul.f32 %v2478_v63, %v239_v4  ;;  %v376_v9 = vmul.f32 %v2485_v1, %v239_v4 }
  0xfb   :  { %v370_v61 = vmul.f32 %v2469_v57, %v234_v58  ;;  %v371_v0 = vmul.f32 %v2478_v63, %v234_v58  ;;  %v372_v2 = vmul.f32 %v2485_v1, %v234_v58  ;;  %v373_v5 = vmul.f32 %v2494_v3, %v234_v58 }
  0xfc   :  { %v377_v10 = vmul.f32 %v2494_v3, %v239_v4 }
  0xfd   :  { %1967 = vmatpush3.xpose.msra.mxu1 %v370_v61 }
  0xfe   :  { %1971 = vmatprep.subr.mxu1 %v2282_v52 }
 0x100   :  { %1969 = vmatmul.mubr.f32.vlgmr.msra.gmra.mrb[2].mxu1 %v134_v62 }
 0x101   :  { %1972 = vmatpush3.xpose.msra.mxu1 %v371_v0  ;;  %1973 = vmatprep.mubr.msk.f32.mxu1 %vm2283_vm0, %v2282_v52 }
 0x102   :  { %1976 = vmatprep.subr.mxu1 %v2282_v52 }
 0x104   :  { %1974 = vmatmul.mubr.f32.vlgmr.msra.gmra.mrb[4].mxu1 %v134_v62 }
 0x105   :  { %1977 = vmatpush3.xpose.msra.mxu1 %v372_v2  ;;  %1978 = vmatprep.mubr.msk.f32.mxu1 %vm2283_vm0, %v2282_v52 }
 0x106   :  { %1981 = vmatprep.subr.mxu1 %v2282_v52 }
 0x108   :  { %1979 = vmatmul.mubr.f32.vlgmr.msra.gmra.mrb[6].mxu1 %v134_v62 }
 0x109   :  { %1982 = vmatpush3.xpose.msra.mxu1 %v373_v5  ;;  %1983 = vmatprep.mubr.msk.f32.mxu1 %vm2283_vm0, %v2282_v52 }
 0x10a   :  { %1986 = vmatprep.subr.mxu1 %v2282_v52 }
 0x10c   :  { %1984 = vmatmul.mubr.f32.vlgmr.msra.gmra.mrb[8].mxu1 %v134_v62 }
 0x10d   :  { %1987 = vmatpush3.xpose.msra.mxu1 %v374_v6  ;;  %1988 = vmatprep.mubr.msk.f32.mxu1 %vm2283_vm0, %v2282_v52 }
 0x10e   :  { %1991 = vmatprep.subr.mxu1 %v2282_v52 }
 0x110   :  { %1989 = vmatmul.mubr.f32.vlgmr.msra.gmra.mrb[10].mxu1 %v139_v7 }
 0x111   :  { %1992 = vmatpush3.xpose.msra.mxu1 %v375_v8  ;;  %1993 = vmatprep.mubr.msk.f32.mxu1 %vm2283_vm0, %v2282_v52 }
 0x112   :  { %1996 = vmatprep.subr.mxu1 %v2282_v52 }
 0x114   :  { %1994 = vmatmul.mubr.f32.vlgmr.msra.gmra.mrb[12].mxu1 %v139_v7 }
 0x115   :  { %1997 = vmatpush3.xpose.msra.mxu1 %v376_v9  ;;  %1998 = vmatprep.mubr.msk.f32.mxu1 %vm2283_vm0, %v2282_v52 }
 0x116   :  { %2001 = vmatprep.subr.mxu1 %v2282_v52 }
 0x118   :  { %1999 = vmatmul.mubr.f32.vlgmr.msra.gmra.mrb[14].mxu1 %v139_v7 }
 0x119   :  { %2002 = vmatpush3.xpose.msra.mxu1 %v377_v10  ;;  %2003 = vmatprep.mubr.msk.f32.mxu1 %vm2283_vm0, %v2282_v52 }
 0x11a   :  { %2006 = vmatprep.subr.mxu1 %v2282_v52 }
 0x11c   :  { %2004 = vmatmul.mubr.f32.vlgmr.msra.gmra.mrb[16].mxu1 %v139_v7 }
 0x11d   :  { %2008 = vmatprep.mubr.msk.f32.mxu1 %vm2283_vm0, %v2282_v52 }
 0x1d3   :  { %v452_v37 = vpop.f32.mrb[2].mxu1 }
 0x1d4   :  { %v1970_v38 = vpop.f32.mrb[3].mxu1  ;;  %v947_v39 = vsel %vm946_vm1, %v452_v37, -inf }
 0x1d5   :  { %948 = vmax.xlane.f32.xlu0 %v947_v39  ;;  %v1965_v38 = vpop.f32.mrb[2].mxu0 }
 0x1d7   :  { %v522_v40 = vpop.f32.mrb[4].mxu1 }
 0x1d8   :  { %v1975_v41 = vpop.f32.mrb[5].mxu1  ;;  %v950_v42 = vsel %vm946_vm1, %v522_v40, -inf }
 0x1d9   :  { %951 = vmax.xlane.f32.xlu0 %v950_v42  ;;  %v333_v41 = vpop.f32.mrb[3].mxu0 }
 0x1db   :  { %v592_v43 = vpop.f32.mrb[6].mxu1 }
 0x1dc   :  { %v1980_v44 = vpop.f32.mrb[7].mxu1  ;;  %v953_v45 = vsel %vm946_vm1, %v592_v43, -inf }
 0x1dd   :  { %954 = vmax.xlane.f32.xlu1 %v953_v45 }
 0x1df   :  { %v662_v46 = vpop.f32.mrb[8].mxu1 }
 0x1e0   :  { %v1985_v47 = vpop.f32.mrb[9].mxu1  ;;  %v956_v48 = vsel %vm946_vm1, %v662_v46, -inf }
 0x1e1   :  { %957 = vmax.xlane.f32.xlu1 %v956_v48  ;;  %v1625_v48 = vld [vmem:[%s2733_s9] sm:$0xff] }
 0x1e3   :  { %v732_v49 = vpop.f32.mrb[10].mxu1 }
 0x1e4   :  { %v1990_v50 = vpop.f32.mrb[11].mxu1  ;;  %v959_v51 = vsel %vm946_vm1, %v732_v49, -inf }
 0x1e5   :  { %960 = vmax.xlane.f32.xlu0 %v959_v51 }
 0x1e7   :  { %v802_v53 = vpop.f32.mrb[12].mxu1 }
 0x1e8   :  { %v1995_v54 = vpop.f32.mrb[13].mxu1  ;;  %v962_v55 = vsel %vm946_vm1, %v802_v53, -inf }
 0x1e9   :  { %963 = vmax.xlane.f32.xlu1 %v962_v55 }
 0x1eb   :  { %v872_v56 = vpop.f32.mrb[14].mxu1 }
 0x1ec   :  { %v2000_v58 = vpop.f32.mrb[15].mxu1  ;;  %v965_v59 = vsel %vm946_vm1, %v872_v56, -inf }
 0x1ed   :  { %966 = vmax.xlane.f32.xlu0 %v965_v59 }
 0x1ef   :  { %v942_v60 = vpop.f32.mrb[16].mxu1 }
 0x1f0   :  { %v2005_v61 = vpop.f32.mrb[17].mxu1  ;;  %v968_v62 = vsel %vm946_vm1, %v942_v60, -inf }
 0x1f1   :  { %969 = vmax.xlane.f32.xlu1 %v968_v62 }
 0x262   :  { %v949_v0 = vpop.xlane.xlu0 %948 }
 0x263   :  { %v971_v2 = vsub.f32 %v452_v37, %v949_v0 }
 0x265   :  { %v979_v4 = vmul.f32 1.442695, %v971_v2 }
 0x266   :  { %v952_v5 = vpop.xlane.xlu0 %951 }
 0x267   :  { %2226 = vpow2.f32 %v979_v4  ;;  %v972_v6 = vsub.f32 %v522_v40, %v952_v5  ;;  %v1743_v40 = vld [vmem:[%s2732_s8] ss:$0 sm:$0xff] }
 0x268   :  { %v334_v44 = vadd.f32 %v1743_v40, %v333_v41 }
 0x269   :  { %v981_v7 = vmul.f32 1.442695, %v972_v6 }
 0x26a   :  { %v955_v8 = vpop.xlane.xlu1 %954  ;;  %v378_v45 = vmul.f32 %v2469_v57, %v334_v44  ;;  %v379_v58 = vmul.f32 %v2478_v63, %v334_v44  ;;  %v380_v62 = vmul.f32 %v2485_v1, %v334_v44  ;;  %v381_v5 = vmul.f32 %v2494_v3, %v334_v44 }
 0x26b   :  { %2228 = vpow2.f32 %v981_v7  ;;  %v973_v9 = vsub.f32 %v592_v43, %v955_v8  ;;  %v2608_v43 = vadd.f32 %v1965_v38, %v1743_v40 }
 0x26c   :  { %2007 = vmatpush3.msra.mxu1 %v378_v45 }
 0x26d   :  { %v983_v10 = vmul.f32 1.442695, %v973_v9  ;;  %2011 = vmatprep.subr.mxu1 %v2282_v52 }
 0x26e   :  { %v958_v11 = vpop.xlane.xlu1 %957 }
 0x26f   :  { %2230 = vpow2.f32 %v983_v10  ;;  %v974_v12 = vsub.f32 %v662_v46, %v958_v11  ;;  %v382_v10 = vmul.f32 %v2469_v57, %v2608_v43 }
 0x271   :  { %v2227_v13 = vpop.eup %2226  ;;  %v985_v14 = vmul.f32 1.442695, %v974_v12 }
 0x272   :  { %v961_v15 = vpop.xlane.xlu0 %960  ;;  %v995_v16 = vsel %vm946_vm1, %v2227_v13, 0.0 }
 0x273   :  { %2232 = vpow2.f32 %v985_v14  ;;  %v975_v17 = vsub.f32 %v732_v49, %v961_v15  ;;  %996 = vadd.xlane.f32.xlu0 %v995_v16  ;;  %v1626_v49 = vld [vmem:[%s2733_s9 + $0x8] sm:$0xff]  ;;  %v384_v16 = vmul.f32 %v2485_v1, %v2608_v43 }
 0x274   :  { %v2177_v50 = vpack.c.bf16 %v1626_v49, %v1625_v48 }
 0x275   :  { %v2229_v18 = vpop.eup %2228  ;;  %v987_v19 = vmul.f32 1.442695, %v975_v17 }
 0x276   :  { %v964_v20 = vpop.xlane.xlu1 %963  ;;  %v998_v21 = vsel %vm946_vm1, %v2229_v18, 0.0  ;;  %2178 = vmatprep.subr.bf16.mxu0 %v2177_v50 }
 0x277   :  { %2234 = vpow2.f32 %v987_v19  ;;  %v976_v22 = vsub.f32 %v802_v53, %v964_v20  ;;  %999 = vadd.xlane.f32.xlu1 %v998_v21  ;;  %2180 = vmatpush3.bf16.msra.mxu0 %v2177_v50  ;;  %v1627_v20 = vld [vmem:[%s2733_s9 + $0x10] sm:$0xff]  ;;  %v1628_v21 = vld [vmem:[%s2733_s9 + $0x18] sm:$0xff] }
 0x279   :  { %v2585_v23 = vpop.eup %2230  ;;  %v989_v24 = vmul.f32 1.442695, %v976_v22  ;;  %v1629_v22 = vld [vmem:[%s2733_s9 + $0x20] sm:$0xff] }
 0x27a   :  { %v967_v25 = vpop.xlane.xlu0 %966  ;;  %v1001_v26 = vsel %vm946_vm1, %v2585_v23, 0.0 }
 0x27b   :  { %2236 = vpow2.f32 %v989_v24  ;;  %v977_v27 = vsub.f32 %v872_v56, %v967_v25  ;;  %1002 = vadd.xlane.f32.xlu0 %v1001_v26  ;;  %v1631_v24 = vld [vmem:[%s2733_s9 + $0x30] sm:$0xff]  ;;  %v1632_v25 = vld [vmem:[%s2733_s9 + $0x38] sm:$0xff] }
 0x27c   :  { %v2189_v26 = vpack.c.bf16 %v1632_v25, %v1631_v24 }
 0x27d   :  { %v2589_v28 = vpop.eup %2232  ;;  %v991_v29 = vmul.f32 1.442695, %v977_v27  ;;  %v1633_v27 = vld [vmem:[%s2733_s9 + $0x40] sm:$0xff] }
 0x27e   :  { %v970_v30 = vpop.xlane.xlu1 %969  ;;  %v1004_v31 = vsel %vm946_vm1, %v2589_v28, 0.0 }
 0x27f   :  { %2238 = vpow2.f32 %v991_v29  ;;  %v978_v32 = vsub.f32 %v942_v60, %v970_v30  ;;  %1005 = vadd.xlane.f32.xlu1 %v1004_v31  ;;  %v1635_v30 = vld [vmem:[%s2733_s9 + $0x50] sm:$0xff]  ;;  %v1636_v31 = vld [vmem:[%s2733_s9 + $0x58] sm:$0xff] }
 0x281   :  { %v2593_v33 = vpop.eup %2234  ;;  %v993_v34 = vmul.f32 1.442695, %v978_v32  ;;  %v2197_v32 = vpack.c.bf16 %v1636_v31, %v1635_v30 }
 0x282   :  { %v1007_v35 = vsel %vm946_vm1, %v2593_v33, 0.0 }
 0x283   :  { %2240 = vpow2.f32 %v993_v34  ;;  %1008 = vadd.xlane.f32.xlu0 %v1007_v35  ;;  %v1638_v34 = vld [vmem:[%s2733_s9 + $0x68] sm:$0xff] }
 0x285   :  { %v2597_v36 = vpop.eup %2236 }
 0x286   :  { %v1010_v37 = vsel %vm946_vm1, %v2597_v36, 0.0 }
 0x287   :  { %1011 = vadd.xlane.f32.xlu1 %v1010_v37  ;;  %v1640_v37 = vld [vmem:[%s2733_s9 + $0x78] sm:$0xff] }
 0x289   :  { %v2601_v39 = vpop.eup %2238 }
 0x28a   :  { %v1013_v42 = vsel %vm946_vm1, %v2601_v39, 0.0 }
 0x28b   :  { %1014 = vadd.xlane.f32.xlu0 %v1013_v42 }
 0x28d   :  { %v2611_v46 = vpop.eup %2240 }
 0x28e   :  { %v1016_v47 = vsel %vm946_vm1, %v2611_v46, 0.0 }
 0x28f   :  { %1017 = vadd.xlane.f32.xlu1 %v1016_v47 }
 0x300   :  { %v997_v51 = vpop.xlane.xlu0 %996 }
 0x301   :  { %2242 = vrcp.f32 %v997_v51 }
 0x304   :  { %v1000_v53 = vpop.xlane.xlu1 %999 }
 0x305   :  { %2244 = vrcp.f32 %v1000_v53 }
 0x308   :  { %v1003_v56 = vpop.xlane.xlu0 %1002 }
 0x309   :  { %2246 = vrcp.f32 %v1003_v56 }
 0x30b   :  { %v2243_v54 = vpop.eup %2242 }
 0x30c   :  { %v1027_v55 = vmul.f32 %v2243_v54, %v2227_v13  ;;  %v1006_v61 = vpop.xlane.xlu1 %1005  ;;  %v383_v13 = vmul.f32 %v2478_v63, %v2608_v43 }
 0x30d   :  { %2248 = vrcp.f32 %v1006_v61 }
 0x30e   :  { %2009 = vmatmul.mubr.msk.f32.vlgmr.msra.gmra.mrb[18].mxu1 %vm946_vm1, %v1027_v55 }
 0x30f   :  { %2012 = vmatpush3.msra.mxu1 %v379_v58  ;;  %2013 = vmatprep.mubr.msk.f32.mxu1 %vm2283_vm0, %v2282_v52  ;;  %v2245_v59 = vpop.eup %2244 }
 0x310   :  { %2016 = vmatprep.subr.mxu1 %v2282_v52  ;;  %v1028_v60 = vmul.f32 %v2245_v59, %v2229_v18  ;;  %v1009_v0 = vpop.xlane.xlu0 %1008  ;;  %v385_v18 = vmul.f32 %v2494_v3, %v2608_v43  ;;  %v2181_v3 = vpack.c.bf16 %v1628_v21, %v1627_v20  ;;  %v1756_v43 = vld [vmem:[%s2734_s10] ss:$0 sm:$0xff] }
 0x311   :  { %2250 = vrcp.f32 %v1009_v0 }
 0x312   :  { %2182 = vmatprep.subr.bf16.mxu0 %v2181_v3 }
 0x313   :  { %v2247_v2 = vpop.eup %2246  ;;  %2184 = vmatpush3.bf16.msra.mxu0 %v2181_v3 }
 0x314   :  { %v1029_v4 = vmul.f32 %v2247_v2, %v2585_v23  ;;  %v1012_v6 = vpop.xlane.xlu1 %1011 }
 0x315   :  { %2252 = vrcp.f32 %v1012_v6 }
 0x316   :  { %2014 = vmatmul.mubr.msk.f32.vlgmr.msra.gmra.mrb[18].mxu1 %vm946_vm1, %v1028_v60 }
 0x317   :  { %2017 = vmatpush3.msra.mxu1 %v380_v62  ;;  %2018 = vmatprep.mubr.msk.f32.mxu1 %vm2283_vm0, %v2282_v52  ;;  %v2249_v7 = vpop.eup %2248 }
 0x318   :  { %2021 = vmatprep.subr.mxu1 %v2282_v52  ;;  %v1030_v8 = vmul.f32 %v2249_v7, %v2589_v28  ;;  %v1015_v12 = vpop.xlane.xlu0 %1014  ;;  %v1634_v28 = vld [vmem:[%s2733_s9 + $0x48] sm:$0xff] }
 0x319   :  { %2254 = vrcp.f32 %v1015_v12  ;;  %v2193_v29 = vpack.c.bf16 %v1634_v28, %v1633_v27 }
 0x31b   :  { %v2251_v9 = vpop.eup %2250 }
 0x31c   :  { %v1031_v11 = vmul.f32 %v2251_v9, %v2593_v33  ;;  %v1018_v15 = vpop.xlane.xlu1 %1017  ;;  %v1637_v33 = vld [vmem:[%s2733_s9 + $0x60] sm:$0xff] }
 0x31d   :  { %2256 = vrcp.f32 %v1018_v15  ;;  %v2201_v35 = vpack.c.bf16 %v1638_v34, %v1637_v33 }
 0x31e   :  { %2019 = vmatmul.mubr.msk.f32.vlgmr.msra.gmra.mrb[18].mxu1 %vm946_vm1, %v1029_v4 }
 0x31f   :  { %2022 = vmatpush3.msra.mxu1 %v381_v5  ;;  %2023 = vmatprep.mubr.msk.f32.mxu1 %vm2283_vm0, %v2282_v52  ;;  %v2253_v57 = vpop.eup %2252 }
 0x320   :  { %2026 = vmatprep.subr.mxu1 %v2282_v52  ;;  %v1032_v14 = vmul.f32 %v2253_v57, %v2597_v36  ;;  %v1639_v36 = vld [vmem:[%s2733_s9 + $0x70] sm:$0xff] }
 0x321   :  { %v2205_v38 = vpack.c.bf16 %v1640_v37, %v1639_v36 }
 0x323   :  { %v2255_v63 = vpop.eup %2254 }
 0x324   :  { %v1033_v17 = vmul.f32 %v2255_v63, %v2601_v39 }
 0x326   :  { %2024 = vmatmul.mubr.msk.f32.vlgmr.msra.gmra.mrb[18].mxu1 %vm946_vm1, %v1030_v8 }
 0x327   :  { %2027 = vmatpush3.msra.mxu1 %v382_v10  ;;  %2028 = vmatprep.mubr.msk.f32.mxu1 %vm2283_vm0, %v2282_v52  ;;  %v2257_v1 = vpop.eup %2256 }
 0x328   :  { %2031 = vmatprep.subr.mxu1 %v2282_v52  ;;  %v1034_v19 = vmul.f32 %v2257_v1, %v2611_v46 }
 0x32a   :  { %2029 = vmatmul.mubr.msk.f32.vlgmr.msra.gmra.mrb[20].mxu1 %vm946_vm1, %v1031_v11 }
 0x32b   :  { %2032 = vmatpush3.msra.mxu1 %v383_v13  ;;  %2033 = vmatprep.mubr.msk.f32.mxu1 %vm2283_vm0, %v2282_v52 }
 0x32c   :  { %2036 = vmatprep.subr.mxu1 %v2282_v52 }
 0x332   :  { %2034 = vmatmul.mubr.msk.f32.vlgmr.msra.gmra.mrb[20].mxu1 %vm946_vm1, %v1032_v14 }
 0x333   :  { %2037 = vmatpush3.msra.mxu1 %v384_v16  ;;  %2038 = vmatprep.mubr.msk.f32.mxu1 %vm2283_vm0, %v2282_v52 }
 0x334   :  { %2041 = vmatprep.subr.mxu1 %v2282_v52 }
 0x33a   :  { %2039 = vmatmul.mubr.msk.f32.vlgmr.msra.gmra.mrb[20].mxu1 %vm946_vm1, %v1033_v17 }
 0x33b   :  { %2042 = vmatpush3.msra.mxu1 %v385_v18  ;;  %2043 = vmatprep.mubr.msk.f32.mxu1 %vm2283_vm0, %v2282_v52  ;;  %v1630_v52 = vld [vmem:[%s2733_s9 + $0x28] sm:$0xff]  ;;  %s2258_s9 = scalar_lea.vmem %s1731_s0, 256 }
 0x33c   :  { %v2185_v23 = vpack.c.bf16 %v1630_v52, %v1629_v22  ;;  %p2259_p0 = scmp.ne.s32.totalorder %s1731_s0, %s2258_s9  ;;  %p2264_p2 = scmp.lt.s32.totalorder %s2258_s9, %s2258_s9 }
 0x33e   :  { %2186 = vmatprep.subr.bf16.mxu0 %v2185_v23  ;;  %p2265_p3 = por %p2264_p2, %p2263_p1 }
 0x33f   :  { %2188 = vmatpush3.bf16.msra.mxu0 %v2185_v23 }
 0x340   :  { %2190 = vmatprep.subr.bf16.mxu0 %v2189_v26  ;;  %p2266_p4 = pnand %p2265_p3, %p2259_p0 }
 0x342   :  { %2044 = vmatmul.mubr.msk.f32.vlgmr.msra.gmra.mrb[20].mxu1 %vm946_vm1, %v1034_v19 }
 0x343   :  { %2192 = vmatpush3.bf16.msra.mxu0 %v2189_v26 }
 0x344   :  { %2194 = vmatprep.subr.bf16.mxu0 %v2193_v29 }
 0x347   :  { %2196 = vmatpush3.bf16.msra.mxu0 %v2193_v29 }
 0x348   :  { %2198 = vmatprep.subr.bf16.mxu0 %v2197_v32 }
 0x34b   :  { %2200 = vmatpush3.bf16.msra.mxu0 %v2197_v32 }
 0x34c   :  { %2202 = vmatprep.subr.bf16.mxu0 %v2201_v35 }
 0x34f   :  { %2204 = vmatpush3.bf16.msra.mxu0 %v2201_v35 }
 0x350   :  { %2206 = vmatprep.subr.bf16.mxu0 %v2205_v38 }
 0x353   :  { %2208 = vmatpush3.bf16.msra.mxu0 %v2205_v38 }
 0x3f9   :  { %v1323_v39 = vpop.f32.mrb[18].mxu1 }
 0x3fa   :  { %v2025_v40 = vpop.f32.mrb[19].mxu1  ;;  %2078 = vmatprep.mubr.f32.mxu0 %v1323_v39 }
 0x415   :  { %v1615_v41 = vpop.f32.mrb[20].mxu1 }
 0x416   :  { %v2045_v42 = vpop.f32.mrb[21].mxu1  ;;  %2079 = vmatmul.mubr.f32.vlgmr.msra.gmra.mrb[4].mxu0 %v1615_v41 }
 0x4e9   :  { %v2080_v44 = vpop.f32.mrb[4].mxu0 }
 0x4ea   :  { %v1720_v45 = vadd.f32 %v2080_v44, %v1756_v43  ;;  %v1714_v46 = vpop.f32.mrb[5].mxu0 }
 0x4eb   :  { %v1715_v47 = vadd.f32 %v1756_v43, %v1714_v46 }
 0x4ec   :  { %1724 = vst [vmem:[#allocation2 + $0x8] sm:$0xff] %v1720_v45 }
 0x4ed   :  { %1723 = vst [vmem:[#allocation2] sm:$0xff] %v1715_v47 }
 0x4ee   :  { %2269 = shalt.err (!%p2266_p4)
}
 0x4ef   :  { %s2270_s10 = scalar_lea.hbm %s2736_s12, 256 }
 0x4f0   :  { %p2271_p5 = scmp.ne.s32.totalorder %s2736_s12, %s2270_s10  ;;  %p2274_p6 = scmp.lt.u32.totalorder %s2270_s10, %s2736_s12 }
 0x4f2   :  { %p2276_p7 = pnand %p2274_p6, %p2271_p5 }
 0x4f4   :  { %2279 = shalt.err (!%p2276_p7)
}
 0x4f5   :  { %s2285_s26 = smov 128   ;;  %s2286_s11 = smov 8  }
 0x4f6   :  { %1736 = dma.vmem_to_hbm [thread:$0]  %s1731_s0, 256, %s2736_s12, [#allocation3], %s2285_s26, %s2285_s26, %s2286_s11  }
 0x4f7   :  { %2280 = dma.done.wait [#allocation3], 256  }
 0x4f8   :  { %2281 = vsyncadd [#allocation3], 4294967040 }
 0x4f9   :  { %1740 = vsyncpa [#allocation3], 1 }

</bundles_post_ra>
